<compile_context>
chip_gen: v5e
topology: v5e:2x2
jax: 0.10.0
libtpu: 0.0.40
codegen_flags: <defaults>
</compile_context>

<pallas_src>
import functools

import jax
import jax.numpy as jnp
from jax import lax
from jax.experimental import pallas as pl
from jax.experimental.pallas import tpu as pltpu


# -----------------------------------------------------------------------------
# Fused kernel: combined conv matmul + masked time max-pool + bias + ReLU
#               + Linear + softmax, for one batch tile.
# -----------------------------------------------------------------------------
def fused_textcnn_kernel(x_col_ref, w_all_ref, cb_ref, lw_ref, lb_ref, o_ref,
                         *, ksizes, batch_tile, seq_len, kernel_num):
    # x_col_ref : (TB*L, Kmax*D) bf16   im2col'd embeddings (K_max taps)
    # w_all_ref : (Kmax*D, n*C)  bf16   zero-padded conv weights, branch-concat
    # cb_ref    : (1, n*C)       f32    conv biases, branch-concat
    # lw_ref    : (n*C, cls)     f32    linear weight (in_features, out)
    # lb_ref    : (1, cls)       f32    linear bias
    # o_ref     : (TB, cls)      f32    OUTPUT: softmax probabilities
    n = len(ksizes)
    C = kernel_num
    nC = n * C
    L = seq_len
    TB = batch_tile

    # One fat MXU matmul for every branch at once, f32 accumulate.
    acc = jnp.dot(x_col_ref[...], w_all_ref[...],
                  preferred_element_type=jnp.float32)            # (TB*L, nC)

    # Per-column time-validity mask: branch j (kernel K_j) is valid for
    # t < L - K_j + 1; wrapped im2col rows are excluded from the max.
    t_idx = lax.broadcasted_iota(jnp.int32, (L, nC), 0)          # (L, nC)
    lout_cols = jnp.concatenate(
        [jnp.full((1, C), L - K + 1, jnp.int32) for K in ksizes], axis=1)
    valid = t_idx < lout_cols                                    # (L, nC)

    # Tile-aligned sublane split (L % 8 == 0) -> masked max over time.
    acc3 = acc.reshape(TB, L, nC)
    neg = jnp.float32(jnp.finfo(jnp.float32).min)
    pooled = jnp.max(jnp.where(valid[None, :, :], acc3, neg), axis=1)  # (TB,nC)

    # Bias + ReLU after the pool (they commute with max).
    feat = jnp.maximum(pooled + cb_ref[...], 0.0)                # (TB, nC)
    # TODO(synk): nn.Dropout omitted (inference/eval semantics => identity).

    logits = jnp.dot(feat, lw_ref[...],
                     preferred_element_type=jnp.float32)         # (TB, cls)
    logits = logits + lb_ref[...]
    m = jnp.max(logits, axis=1, keepdims=True)
    e = jnp.exp(logits - m)
    denom = jnp.sum(e, axis=1, keepdims=True)
    o_ref[...] = e * pl.reciprocal(denom, approx=True)           # EUP reciprocal


def _pick_batch_tile(B):
    """Batch rows per grid step.  Small B: single block.  Large B: multiple of
    8 dividing B so the out BlockSpec stays (8,128)-legal."""
    if B <= 8:
        return B
    for tb in (128, 64, 32, 16, 8):
        if B % tb == 0:
            return tb
    return B


# -----------------------------------------------------------------------------
# Full TextCNN forward: embedding gather + single im2col (XLA glue, fuses with
# the gather) + one pallas_call.
# -----------------------------------------------------------------------------
def textcnn_forward(tokens, params, kernel_size_list):
    x_emb = params["embedding"][tokens]                          # (B, L, D) f32
    B, L, D = x_emb.shape
    x_bf = x_emb.astype(jnp.bfloat16)

    ksizes = tuple(kernel_size_list)
    Kmax = max(ksizes)
    n = len(ksizes)

    # One im2col slab for the LARGEST kernel; smaller branches read a prefix
    # of its contraction dim via zero-padded weights.  Wrapped rows (l >= lout)
    # are masked inside the kernel, so jnp.roll is safe.
    x_col = jnp.concatenate([jnp.roll(x_bf, -k, axis=1) for k in range(Kmax)],
                            axis=-1).reshape(B * L, Kmax * D)    # (B*L, Kmax*D)

    # Zero-pad each branch's weight to Kmax taps, flatten tap-major, and
    # concatenate along out-channels -> one combined MXU RHS.
    w_blocks = []
    for K in ksizes:
        w = params[f"conv_w_{K}"].astype(jnp.bfloat16)           # (K, D, C)
        w = jnp.pad(w, ((0, Kmax - K), (0, 0), (0, 0)))          # (Kmax, D, C)
        w_blocks.append(w.reshape(Kmax * D, -1))
    w_all = jnp.concatenate(w_blocks, axis=1)                    # (Kmax*D, n*C)

    cb_all = jnp.concatenate([params[f"conv_b_{K}"] for K in ksizes],
                             axis=1)                             # (1, n*C) f32
    lw = params["lin_w"]                                         # (n*C, cls) f32
    lb = params["lin_b"]                                         # (1, cls)  f32

    C = w_blocks[0].shape[-1]
    nC = n * C
    num_class = lw.shape[-1]
    KD = Kmax * D

    TB = _pick_batch_tile(B)
    nb = B // TB

    kernel = functools.partial(fused_textcnn_kernel,
                               ksizes=ksizes, batch_tile=TB,
                               seq_len=L, kernel_num=C)

    return pl.pallas_call(
        kernel,
        out_shape=jax.ShapeDtypeStruct((B, num_class), jnp.float32),
        grid=(nb,),
        in_specs=[
            pl.BlockSpec((TB * L, KD), lambda i: (i, 0)),        # x_col (batch-tiled)
            pl.BlockSpec((KD, nC), lambda i: (0, 0)),            # w_all
            pl.BlockSpec((1, nC), lambda i: (0, 0)),             # conv bias
            pl.BlockSpec((nC, num_class), lambda i: (0, 0)),     # linear weight
            pl.BlockSpec((1, num_class), lambda i: (0, 0)),      # linear bias
        ],
        out_specs=pl.BlockSpec((TB, num_class), lambda i: (i, 0)),
        compiler_params=pltpu.CompilerParams(
            dimension_semantics=("parallel",)),
    )(x_col, w_all, cb_all, lw, lb)


# -----------------------------------------------------------------------------
# Pure-JAX reference (full f32 precision) for correctness check.
# -----------------------------------------------------------------------------
def textcnn_reference(tokens, params, kernel_size_list):
    x_emb = params["embedding"][tokens]
    B, L, D = x_emb.shape
    pooled = []
    for k in kernel_size_list:
        w = params[f"conv_w_{k}"]                                # (K, D, C)
        b = params[f"conv_b_{k}"]                                # (1, C)
        lout = L - k + 1
        acc = jnp.zeros((B, lout, w.shape[-1]), jnp.float32)
        for t in range(k):
            acc = acc + jnp.einsum("bld,dc->blc", x_emb[:, t:t + lout, :], w[t],
                                   precision=jax.lax.Precision.HIGHEST)
        acc = jnp.maximum(acc + b[None, :, :], 0.0)
        pooled.append(jnp.max(acc, axis=1))
    feat = jnp.concatenate(pooled, axis=1)
    logits = jnp.dot(feat, params["lin_w"],
                     precision=jax.lax.Precision.HIGHEST) + params["lin_b"][0]
    return jax.nn.softmax(logits, axis=1)


if __name__ == "__main__":
    # Small, module-consistent shapes.
    class_num = 4
    embed_size = 50          # vocab size
    embed_dim = 64
    kernel_num = 128
    kernel_size_list = (3, 4, 5)
    batch = 2
    seq_len = 16

    key = jax.random.PRNGKey(0)
    keys = jax.random.split(key, 10)

    params = {
        "embedding": jax.random.normal(keys[0], (embed_size, embed_dim), jnp.float32),
        "lin_w": 0.05 * jax.random.normal(
            keys[1], (kernel_num * len(kernel_size_list), class_num), jnp.float32),
        "lin_b": 0.05 * jax.random.normal(keys[2], (1, class_num), jnp.float32),
    }
    for i, k in enumerate(kernel_size_list):
        params[f"conv_w_{k}"] = 0.1 * jax.random.normal(
            keys[3 + i], (k, embed_dim, kernel_num), jnp.float32)
        params[f"conv_b_{k}"] = 0.1 * jax.random.normal(
            keys[6 + i], (1, kernel_num), jnp.float32)

    tokens = jax.random.randint(keys[9], (batch, seq_len), 0, embed_size, jnp.int32)

    fwd = jax.jit(functools.partial(textcnn_forward,
                                    kernel_size_list=kernel_size_list))
    out = fwd(tokens, params)
    out = jax.block_until_ready(out)

    ref = textcnn_reference(tokens, params, kernel_size_list)
    assert out.shape == (batch, class_num)
    # bf16 conv-matmul operands (f32 accumulation) => loosened tolerance.
    assert jnp.allclose(out, ref, rtol=2e-2, atol=2e-2), "mismatch vs reference"

    print("KERNEL_OK")
</pallas_src>

<mosaic_0001>
module attributes {stable_mosaic.version = 11 : i64} {
  func.func @fused_textcnn_kernel(%arg0: i32, %arg1: memref<32x320xbf16, #tpu.memory_space<vmem>>, %arg2: memref<320x384xbf16, #tpu.memory_space<vmem>>, %arg3: memref<1x384xf32, #tpu.memory_space<vmem>>, %arg4: memref<384x4xf32, #tpu.memory_space<vmem>>, %arg5: memref<1x4xf32, #tpu.memory_space<vmem>>, %arg6: memref<2x4xf32, #tpu.memory_space<vmem>>) attributes {dimension_semantics = [#tpu.dimension_semantics<parallel>], iteration_bounds = array<i64: 1>, scalar_prefetch = 0 : i64, scratch_operands = 0 : i64, tpu.core_type = #tpu.core_type<tc>, window_params = [{transform_indices = @transform_0, window_bounds = array<i64: 32, 320>}, {pipeline_mode = #tpu.pipeline_mode<synchronous>, transform_indices = @transform_1, window_bounds = array<i64: 320, 384>}, {pipeline_mode = #tpu.pipeline_mode<synchronous>, transform_indices = @transform_2, window_bounds = array<i64: 1, 384>}, {pipeline_mode = #tpu.pipeline_mode<synchronous>, transform_indices = @transform_3, window_bounds = array<i64: 384, 4>}, {pipeline_mode = #tpu.pipeline_mode<synchronous>, transform_indices = @transform_4, window_bounds = array<i64: 1, 4>}, {transform_indices = @transform_5, window_bounds = array<i64: 2, 4>}]} {
    %c0 = arith.constant 0 : index
    %c0_0 = arith.constant 0 : index
    %0 = vector.load %arg1[%c0, %c0_0] : memref<32x320xbf16, #tpu.memory_space<vmem>>, vector<32x320xbf16>
    %c0_1 = arith.constant 0 : index
    %c0_2 = arith.constant 0 : index
    %1 = vector.load %arg2[%c0_1, %c0_2] : memref<320x384xbf16, #tpu.memory_space<vmem>>, vector<320x384xbf16>
    %cst = arith.constant dense<0.000000e+00> : vector<32x384xf32>
    %2 = tpu.matmul %0, %1, %cst {dimension_numbers = #tpu.dot_dimension_numbers<[1], [0], [0], [1], [0, 0, 1, 1], [], []>} : vector<32x320xbf16>, vector<320x384xbf16>, vector<32x384xf32> -> vector<32x384xf32>
    %3 = tpu.iota {dimensions = array<i32: 0>} : vector<16x384xi32>
    %c14_i32 = arith.constant 14 : i32
    %4 = vector.broadcast %c14_i32 : i32 to vector<1x128xi32>
    %c13_i32 = arith.constant 13 : i32
    %5 = vector.broadcast %c13_i32 : i32 to vector<1x128xi32>
    %c12_i32 = arith.constant 12 : i32
    %6 = vector.broadcast %c12_i32 : i32 to vector<1x128xi32>
    %7 = tpu.concatenate %4, %5, %6 in 1 : vector<1x128xi32>, vector<1x128xi32>, vector<1x128xi32> -> vector<1x384xi32>
    %8 = vector.broadcast %7 : vector<1x384xi32> to vector<16x384xi32>
    %9 = arith.cmpi slt, %3, %8 : vector<16x384xi32>
    %10 = vector.shape_cast %2 : vector<32x384xf32> to vector<2x16x384xf32>
    %11 = vector.shape_cast %9 : vector<16x384xi1> to vector<1x16x384xi1>
    %cst_3 = arith.constant -3.40282347E+38 : f32
    %12 = vector.shape_cast %11 : vector<1x16x384xi1> to vector<1x16x384xi1>
    %13 = vector.broadcast %12 : vector<1x16x384xi1> to vector<2x16x384xi1>
    %14 = vector.broadcast %cst_3 : f32 to vector<2x16x384xf32>
    %15 = arith.select %13, %10, %14 : vector<2x16x384xi1>, vector<2x16x384xf32>
    %cst_4 = arith.constant dense<0xFF800000> : vector<2x384xf32>
    %16 = vector.multi_reduction <maximumf>, %15, %cst_4 [1] : vector<2x16x384xf32> to vector<2x384xf32>
    %c0_5 = arith.constant 0 : index
    %c0_6 = arith.constant 0 : index
    %17 = vector.load %arg3[%c0_5, %c0_6] : memref<1x384xf32, #tpu.memory_space<vmem>>, vector<1x384xf32>
    %18 = vector.broadcast %17 : vector<1x384xf32> to vector<2x384xf32>
    %19 = arith.addf %16, %18 : vector<2x384xf32>
    %cst_7 = arith.constant 0.000000e+00 : f32
    %20 = vector.broadcast %cst_7 : f32 to vector<2x384xf32>
    %21 = arith.maximumf %19, %20 : vector<2x384xf32>
    %c0_8 = arith.constant 0 : index
    %c0_9 = arith.constant 0 : index
    %22 = vector.load %arg4[%c0_8, %c0_9] : memref<384x4xf32, #tpu.memory_space<vmem>>, vector<384x4xf32>
    %cst_10 = arith.constant dense<0.000000e+00> : vector<2x4xf32>
    %23 = tpu.matmul %21, %22, %cst_10 {dimension_numbers = #tpu.dot_dimension_numbers<[1], [0], [0], [1], [0, 0, 1, 1], [], []>} : vector<2x384xf32>, vector<384x4xf32>, vector<2x4xf32> -> vector<2x4xf32>
    %c0_11 = arith.constant 0 : index
    %c0_12 = arith.constant 0 : index
    %24 = vector.load %arg5[%c0_11, %c0_12] : memref<1x4xf32, #tpu.memory_space<vmem>>, vector<1x4xf32>
    %25 = vector.broadcast %24 : vector<1x4xf32> to vector<2x4xf32>
    %26 = arith.addf %23, %25 : vector<2x4xf32>
    %cst_13 = arith.constant dense<0xFF800000> : vector<2xf32>
    %27 = vector.multi_reduction <maximumf>, %26, %cst_13 [1] : vector<2x4xf32> to vector<2xf32>
    %28 = vector.shape_cast %27 : vector<2xf32> to vector<2x1xf32>
    %29 = vector.broadcast %28 : vector<2x1xf32> to vector<2x4xf32>
    %30 = arith.subf %26, %29 : vector<2x4xf32>
    %31 = math.exp %30 : vector<2x4xf32>
    %cst_14 = arith.constant dense<0.000000e+00> : vector<2xf32>
    %32 = vector.multi_reduction <add>, %31, %cst_14 [1] : vector<2x4xf32> to vector<2xf32>
    %33 = vector.shape_cast %32 : vector<2xf32> to vector<2x1xf32>
    %34 = tpu.reciprocal %33 {approx = true} : vector<2x1xf32> -> vector<2x1xf32>
    %35 = vector.broadcast %34 : vector<2x1xf32> to vector<2x4xf32>
    %36 = arith.mulf %31, %35 : vector<2x4xf32>
    %c0_15 = arith.constant 0 : index
    %c0_16 = arith.constant 0 : index
    %37 = vector.load %arg6[%c0_15, %c0_16] : memref<2x4xf32, #tpu.memory_space<vmem>>, vector<2x4xf32>
    tpu.vector_store %arg6[%c0_15, %c0_16], %36 {strides = array<i32>} : memref<2x4xf32, #tpu.memory_space<vmem>>, vector<2x4xf32>,
    return
  }
  func.func @transform_0(%arg0: i32) -> (i32, i32) {
    %c0_i32 = arith.constant 0 : i32
    %c0_i32_0 = arith.constant 0 : i32
    return %arg0, %c0_i32 : i32, i32
  }
  func.func @transform_1(%arg0: i32) -> (i32, i32) {
    %c0_i32 = arith.constant 0 : i32
    %c0_i32_0 = arith.constant 0 : i32
    %c0_i32_1 = arith.constant 0 : i32
    return %c0_i32, %c0_i32_0 : i32, i32
  }
  func.func @transform_2(%arg0: i32) -> (i32, i32) {
    %c0_i32 = arith.constant 0 : i32
    %c0_i32_0 = arith.constant 0 : i32
    %c0_i32_1 = arith.constant 0 : i32
    return %c0_i32, %c0_i32_0 : i32, i32
  }
  func.func @transform_3(%arg0: i32) -> (i32, i32) {
    %c0_i32 = arith.constant 0 : i32
    %c0_i32_0 = arith.constant 0 : i32
    %c0_i32_1 = arith.constant 0 : i32
    return %c0_i32, %c0_i32_0 : i32, i32
  }
  func.func @transform_4(%arg0: i32) -> (i32, i32) {
    %c0_i32 = arith.constant 0 : i32
    %c0_i32_0 = arith.constant 0 : i32
    %c0_i32_1 = arith.constant 0 : i32
    return %c0_i32, %c0_i32_0 : i32, i32
  }
  func.func @transform_5(%arg0: i32) -> (i32, i32) {
    %c0_i32 = arith.constant 0 : i32
    %c0_i32_0 = arith.constant 0 : i32
    return %arg0, %c0_i32 : i32, i32
  }
}

</mosaic_0001>

<bundles_post_ra>
// kernel: textcnn_forward.1
= control target key start
LH: loop header
LB: loop body
LE: loop exit
PB: predicated region body
PF: predicated region fallthrough
CT: control target
= control target key end

     0   :  { %vm460_vm0 = vcmask 523264   ;;  %s1936_s0 = inlined_call_operand.vmem [shape: bf16[32,320], index: 0, kind: input, shape index: {}]   ;;  %s1937_s1 = inlined_call_operand.vmem [shape: bf16[320,384], index: 1, kind: input, shape index: {}]   ;;  %s1938_s2 = inlined_call_operand.vmem [shape: f32[1,384], index: 2, kind: input, shape index: {}]   ;;  %s1939_s3 = inlined_call_operand.vmem [shape: f32[384,4], index: 3, kind: input, shape index: {}]   ;;  %s1940_s4 = inlined_call_operand.vmem [shape: f32[1,4], index: 4, kind: input, shape index: {}]   ;;  %s1941_s5 = inlined_call_operand.hbm [shape: f32[2,4], index: 5, kind: output, shape index: {}]  }
   0x1   :  { %v1003_v0 = vld [vmem:[%s1937_s1 + $0xa8] sm:$0xf]  ;;  %v1191_v1 = vld [vmem:[%s1937_s1 + $0xb0] sm:$0xf0]  ;;  %v991_v9 = vld [vmem:[%s1937_s1 + $0x90] sm:$0xf] }
   0x2   :  { %v1099_v2 = vld [vmem:[%s1937_s1 + $0x168] sm:$0xf]  ;;  %v1004_v3 = vor.u32 %v1191_v1, %v1003_v0  ;;  %v1215_v4 = vld [vmem:[%s1937_s1 + $0x170] sm:$0xf0]  ;;  %v1188_v10 = vld [vmem:[%s1937_s1 + $0x98] sm:$0xf0] }
   0x3   :  { %v1147_v5 = vld [vmem:[%s1937_s1 + $0x1c8] sm:$0xf]  ;;  %v1227_v6 = vld [vmem:[%s1937_s1 + $0x1d0] sm:$0xf0]  ;;  %v1100_v7 = vor.u32 %v1215_v4, %v1099_v2  ;;  %v1087_v11 = vld [vmem:[%s1937_s1 + $0x150] sm:$0xf]  ;;  %v992_v12 = vor.u32 %v1188_v10, %v991_v9 }
   0x4   :  { %v1148_v8 = vor.u32 %v1227_v6, %v1147_v5  ;;  %467 = vmatpush.bf16.msra.mxu0 %v1004_v3  ;;  %v1212_v13 = vld [vmem:[%s1937_s1 + $0x158] sm:$0xf0]  ;;  %v1135_v14 = vld [vmem:[%s1937_s1 + $0x1b0] sm:$0xf]  ;;  %v1190_v18 = vld [vmem:[%s1937_s1 + $0xac] sm:$0xf] }
   0x5   :  { %v1224_v15 = vld [vmem:[%s1937_s1 + $0x1b8] sm:$0xf0]  ;;  %486 = vmatpush.bf16.msra.mxu1 %v1100_v7  ;;  %v1088_v16 = vor.u32 %v1212_v13, %v1087_v11  ;;  %v1005_v19 = vld [vmem:[%s1937_s1 + $0xb4] sm:$0xf0]  ;;  %v1185_v22 = vld [vmem:[%s1937_s1 + $0x80] sm:$0xf0] }
   0x6   :  { %509 = vmatpush.bf16.msra.mxu2 %v1148_v8  ;;  %v1136_v17 = vor.u32 %v1224_v15, %v1135_v14  ;;  %v979_v20 = vld [vmem:[%s1937_s1 + $0x78] sm:$0xf]  ;;  %v1008_v21 = vor.u32 %v1190_v18, %v1005_v19  ;;  %v1209_v24 = vld [vmem:[%s1937_s1 + $0x140] sm:$0xf0]  ;;  %v1187_v27 = vld [vmem:[%s1937_s1 + $0x94] sm:$0xf] }
   0x7   :  { %v1075_v23 = vld [vmem:[%s1937_s1 + $0x138] sm:$0xf]  ;;  %v1221_v26 = vld [vmem:[%s1937_s1 + $0x1a0] sm:$0xf0]  ;;  %v980_v28 = vor.u32 %v1185_v22, %v979_v20  ;;  %v993_v29 = vld [vmem:[%s1937_s1 + $0x9c] sm:$0xf0] }
   0x8   :  { %v1123_v25 = vld [vmem:[%s1937_s1 + $0x198] sm:$0xf]  ;;  %468 = vmatpush.bf16.msra.mxu0 %v992_v12  ;;  %524 = vmatpush.bf16.msra.mxu3 %v1008_v21  ;;  %v967_v30 = vld [vmem:[%s1937_s1 + $0x60] sm:$0xf]  ;;  %v1182_v31 = vld [vmem:[%s1937_s1 + $0x68] sm:$0xf0]  ;;  %v1076_v32 = vor.u32 %v1209_v24, %v1075_v23  ;;  %v996_v34 = vor.u32 %v1187_v27, %v993_v29 }
   0x9   :  { %487 = vmatpush.bf16.msra.mxu1 %v1088_v16  ;;  %v1124_v33 = vor.u32 %v1221_v26, %v1123_v25  ;;  %v1063_v35 = vld [vmem:[%s1937_s1 + $0x120] sm:$0xf]  ;;  %v1206_v36 = vld [vmem:[%s1937_s1 + $0x128] sm:$0xf0]  ;;  %v1184_v39 = vld [vmem:[%s1937_s1 + $0x7c] sm:$0xf]  ;;  %v968_v42 = vor.u32 %v1182_v31, %v967_v30 }
   0xa   :  { %510 = vmatpush.bf16.msra.mxu2 %v1136_v17  ;;  %v1111_v37 = vld [vmem:[%s1937_s1 + $0x180] sm:$0xf]  ;;  %v1218_v38 = vld [vmem:[%s1937_s1 + $0x188] sm:$0xf0]  ;;  %v981_v40 = vld [vmem:[%s1937_s1 + $0x84] sm:$0xf0]  ;;  %v1064_v47 = vor.u32 %v1206_v36, %v1063_v35 }
   0xb   :  { %v903_v41 = vld [vmem:[%s1936_s0 + $0x8] sm:$0xf]  ;;  %v984_v43 = vor.u32 %v1184_v39, %v981_v40  ;;  %v1165_v44 = vld [vmem:[%s1936_s0 + $0x10] sm:$0xf0]  ;;  %v1214_v45 = vld [vmem:[%s1937_s1 + $0x16c] sm:$0xf]  ;;  %v1112_v48 = vor.u32 %v1218_v38, %v1111_v37 }
   0xc   :  { %469 = vmatpush.bf16.msra.mxu0 %v980_v28  ;;  %525 = vmatpush.bf16.msra.mxu3 %v996_v34  ;;  %v1101_v46 = vld [vmem:[%s1937_s1 + $0x174] sm:$0xf0]  ;;  %v955_v49 = vld [vmem:[%s1937_s1 + $0x48] sm:$0xf]  ;;  %v1179_v50 = vld [vmem:[%s1937_s1 + $0x50] sm:$0xf0]  ;;  %v1424_v58 = vor.u32 %v1165_v44, %v903_v41 }
   0xd   :  { %488 = vmatpush.bf16.msra.mxu1 %v1076_v32  ;;  %v1051_v51 = vld [vmem:[%s1937_s1 + $0x108] sm:$0xf]  ;;  %v1104_v52 = vor.u32 %v1214_v45, %v1101_v46  ;;  %v1203_v53 = vld [vmem:[%s1937_s1 + $0x110] sm:$0xf0]  ;;  %v1181_v54 = vld [vmem:[%s1937_s1 + $0x64] sm:$0xf]  ;;  %v956_v59 = vor.u32 %v1179_v50, %v955_v49 }
   0xe   :  { %511 = vmatpush.bf16.msra.mxu2 %v1124_v33  ;;  %v969_v55 = vld [vmem:[%s1937_s1 + $0x6c] sm:$0xf0]  ;;  %v1211_v56 = vld [vmem:[%s1937_s1 + $0x154] sm:$0xf]  ;;  %v1089_v57 = vld [vmem:[%s1937_s1 + $0x15c] sm:$0xf0]  ;;  %v1052_v60 = vor.u32 %v1203_v53, %v1051_v51 }
   0xf   :  { %v972_v61 = vor.u32 %v1181_v54, %v969_v55  ;;  %v943_v62 = vld [vmem:[%s1937_s1 + $0x30] sm:$0xf]  ;;  %v1176_v63 = vld [vmem:[%s1937_s1 + $0x38] sm:$0xf0]  ;;  %v1092_v1 = vor.u32 %v1211_v56, %v1089_v57  ;;  %v1178_v3 = vld [vmem:[%s1937_s1 + $0x4c] sm:$0xf] }
  0x10   :  { %470 = vmatpush.bf16.msra.mxu0 %v968_v42  ;;  %526 = vmatpush.bf16.msra.mxu3 %v984_v43  ;;  %v1039_v0 = vld [vmem:[%s1937_s1 + $0xf0] sm:$0xf]  ;;  %v1200_v2 = vld [vmem:[%s1937_s1 + $0xf8] sm:$0xf0]  ;;  %v957_v4 = vld [vmem:[%s1937_s1 + $0x54] sm:$0xf0]  ;;  %v944_v7 = vor.u32 %v1176_v63, %v943_v62 }
  0x11   :  { %489 = vmatpush.bf16.msra.mxu1 %v1064_v47  ;;  %v1208_v5 = vld [vmem:[%s1937_s1 + $0x13c] sm:$0xf]  ;;  %v1077_v6 = vld [vmem:[%s1937_s1 + $0x144] sm:$0xf0]  ;;  %v1040_v8 = vor.u32 %v1200_v2, %v1039_v0  ;;  %v960_v9 = vor.u32 %v1178_v3, %v957_v4  ;;  %v931_v10 = vld [vmem:[%s1937_s1 + $0x18] sm:$0xf] }
  0x12   :  { %512 = vmatpush.bf16.msra.mxu2 %v1112_v48  ;;  %v1173_v11 = vld [vmem:[%s1937_s1 + $0x20] sm:$0xf0]  ;;  %v1027_v12 = vld [vmem:[%s1937_s1 + $0xd8] sm:$0xf]  ;;  %v1080_v13 = vor.u32 %v1208_v5, %v1077_v6  ;;  %v1175_v15 = vld [vmem:[%s1937_s1 + $0x34] sm:$0xf] }
  0x13   :  { %v1197_v14 = vld [vmem:[%s1937_s1 + $0xe0] sm:$0xf0]  ;;  %v945_v16 = vld [vmem:[%s1937_s1 + $0x3c] sm:$0xf0]  ;;  %v1065_v18 = vld [vmem:[%s1937_s1 + $0x12c] sm:$0xf0]  ;;  %v932_v19 = vor.u32 %v1173_v11, %v931_v10 }
  0x14   :  { %471 = vmatpush.bf16.msra.mxu0 %v956_v59  ;;  %527 = vmatpush.bf16.msra.mxu3 %v972_v61  ;;  %v1205_v17 = vld [vmem:[%s1937_s1 + $0x124] sm:$0xf]  ;;  %v919_v20 = vld [vmem:[%s1937_s1] sm:$0xf]  ;;  %v1028_v21 = vor.u32 %v1197_v14, %v1027_v12  ;;  %v948_v22 = vor.u32 %v1175_v15, %v945_v16  ;;  %v1170_v23 = vld [vmem:[%s1937_s1 + $0x8] sm:$0xf0] }
  0x15   :  { %1157 = vmatmul.msk.bf16.vlgmr.msra.gmra.mxu2 %vm460_vm0, %v1424_v58  ;;  %490 = vmatpush.bf16.msra.mxu1 %v1052_v60  ;;  %v1015_v24 = vld [vmem:[%s1937_s1 + $0xc0] sm:$0xf]  ;;  %v1194_v25 = vld [vmem:[%s1937_s1 + $0xc8] sm:$0xf0]  ;;  %v1068_v26 = vor.u32 %v1205_v17, %v1065_v18  ;;  %v1172_v27 = vld [vmem:[%s1937_s1 + $0x1c] sm:$0xf]  ;;  %v920_v33 = vor.u32 %v1170_v23, %v919_v20 }
  0x16   :  { %543 = vmatpush.bf16.msrb.mxu2 %v1104_v52  ;;  %v933_v28 = vld [vmem:[%s1937_s1 + $0x24] sm:$0xf0]  ;;  %v895_v29 = vld [vmem:[%s1936_s0] sm:$0xf]  ;;  %v1164_v30 = vld [vmem:[%s1936_s0 + $0x8] sm:$0xf0]  ;;  %v1016_v37 = vor.u32 %v1194_v25, %v1015_v24 }
  0x17   :  { %v1202_v31 = vld [vmem:[%s1937_s1 + $0x10c] sm:$0xf]  ;;  %v1053_v32 = vld [vmem:[%s1937_s1 + $0x114] sm:$0xf0]  ;;  %v1163_v34 = vld [vmem:[%s1936_s0 + $0x4] sm:$0xf]  ;;  %v936_v38 = vor.u32 %v1172_v27, %v933_v28  ;;  %v1533_v47 = vor.u32 %v1164_v30, %v895_v29 }
  0x18   :  { %472 = vmatpush.bf16.msra.mxu0 %v944_v7  ;;  %528 = vmatpush.bf16.msra.mxu3 %v960_v9  ;;  %v897_v35 = vld [vmem:[%s1936_s0 + $0xc] sm:$0xf0]  ;;  %v915_v36 = vld [vmem:[%s1936_s0 + $0x20] sm:$0xf]  ;;  %v1168_v39 = vld [vmem:[%s1936_s0 + $0x28] sm:$0xf0]  ;;  %v1056_v42 = vor.u32 %v1202_v31, %v1053_v32 }
  0x19   :  { %491 = vmatpush.bf16.msra.mxu1 %v1040_v8  ;;  %v1011_v40 = vld [vmem:[%s1937_s1 + $0xb0] sm:$0xf]  ;;  %v1192_v41 = vld [vmem:[%s1937_s1 + $0xb8] sm:$0xf0]  ;;  %v1169_v43 = vld [vmem:[%s1937_s1 + $0x4] sm:$0xf]  ;;  %v1544_v51 = vor.u32 %v1163_v34, %v897_v35  ;;  %v1546_v52 = vor.u32 %v1168_v39, %v915_v36 }
  0x1a   :  { %544 = vmatpush.bf16.msrb.mxu2 %v1092_v1  ;;  %v921_v44 = vld [vmem:[%s1937_s1 + $0xc] sm:$0xf0]  ;;  %v1199_v45 = vld [vmem:[%s1937_s1 + $0xf4] sm:$0xf]  ;;  %v1012_v46 = vor.u32 %v1192_v41, %v1011_v40  ;;  %v1041_v48 = vld [vmem:[%s1937_s1 + $0xfc] sm:$0xf0] }
  0x1b   :  { %v1107_v49 = vld [vmem:[%s1937_s1 + $0x170] sm:$0xf]  ;;  %v1216_v50 = vld [vmem:[%s1937_s1 + $0x178] sm:$0xf0]  ;;  %v1226_v53 = vld [vmem:[%s1937_s1 + $0x1cc] sm:$0xf]  ;;  %v924_v54 = vor.u32 %v1169_v43, %v921_v44  ;;  %v1044_v59 = vor.u32 %v1199_v45, %v1041_v48 }
  0x1c   :  { %473 = vmatpush.bf16.msra.mxu0 %v932_v19  ;;  %529 = vmatpush.bf16.msra.mxu3 %v948_v22  ;;  %v1149_v55 = vld [vmem:[%s1937_s1 + $0x1d4] sm:$0xf0]  ;;  %v1189_v57 = vld [vmem:[%s1937_s1 + $0xa0] sm:$0xf0]  ;;  %v1108_v60 = vor.u32 %v1216_v50, %v1107_v49  ;;  %v1196_v61 = vld [vmem:[%s1937_s1 + $0xdc] sm:$0xf] }
  0x1d   :  { %492 = vmatpush.bf16.msra.mxu1 %v1028_v21  ;;  %v999_v56 = vld [vmem:[%s1937_s1 + $0x98] sm:$0xf]  ;;  %v1029_v62 = vld [vmem:[%s1937_s1 + $0xe4] sm:$0xf0]  ;;  %v1152_v63 = vor.u32 %v1226_v53, %v1149_v55  ;;  %v1223_v0 = vld [vmem:[%s1937_s1 + $0x1b4] sm:$0xf] }
  0x1e   :  { %545 = vmatpush.bf16.msrb.mxu2 %v1080_v13  ;;  %v1095_v1 = vld [vmem:[%s1937_s1 + $0x158] sm:$0xf]  ;;  %v1213_v2 = vld [vmem:[%s1937_s1 + $0x160] sm:$0xf0]  ;;  %v1000_v3 = vor.u32 %v1189_v57, %v999_v56  ;;  %v1137_v4 = vld [vmem:[%s1937_s1 + $0x1bc] sm:$0xf0]  ;;  %v1032_v9 = vor.u32 %v1196_v61, %v1029_v62 }
  0x1f   :  { %v987_v5 = vld [vmem:[%s1937_s1 + $0x80] sm:$0xf]  ;;  %v1186_v6 = vld [vmem:[%s1937_s1 + $0x88] sm:$0xf0]  ;;  %v1193_v7 = vld [vmem:[%s1937_s1 + $0xc4] sm:$0xf]  ;;  %v1140_v8 = vor.u32 %v1223_v0, %v1137_v4  ;;  %v1096_v10 = vor.u32 %v1213_v2, %v1095_v1 }
  0x20   :  { %474 = vmatpush.bf16.msra.mxu0 %v920_v33  ;;  %530 = vmatpush.bf16.msra.mxu3 %v936_v38  ;;  %v1017_v11 = vld [vmem:[%s1937_s1 + $0xcc] sm:$0xf0]  ;;  %v1220_v12 = vld [vmem:[%s1937_s1 + $0x19c] sm:$0xf]  ;;  %v1125_v13 = vld [vmem:[%s1937_s1 + $0x1a4] sm:$0xf0]  ;;  %v988_v17 = vor.u32 %v1186_v6, %v987_v5 }
  0x21   :  { %493 = vmatpush.bf16.msra.mxu1 %v1016_v37  ;;  %v1083_v14 = vld [vmem:[%s1937_s1 + $0x140] sm:$0xf]  ;;  %v1210_v15 = vld [vmem:[%s1937_s1 + $0x148] sm:$0xf0]  ;;  %v1155_v16 = vld [vmem:[%s1937_s1 + $0x1d0] sm:$0xf]  ;;  %v1128_v21 = vor.u32 %v1220_v12, %v1125_v13  ;;  %v1020_v22 = vor.u32 %v1193_v7, %v1017_v11 }
  0x22   :  { %546 = vmatpush.bf16.msrb.mxu2 %v1068_v26  ;;  %v1228_v18 = vld [vmem:[%s1937_s1 + $0x1d8] sm:$0xf0]  ;;  %v975_v19 = vld [vmem:[%s1937_s1 + $0x68] sm:$0xf]  ;;  %v1183_v20 = vld [vmem:[%s1937_s1 + $0x70] sm:$0xf0]  ;;  %v1084_v23 = vor.u32 %v1210_v15, %v1083_v14 }
  0x23   :  { %475 = vmatmul.bf16.vlgmr.msra.gmra.mxu0 %v1533_v47  ;;  %v907_v24 = vld [vmem:[%s1936_s0 + $0x18] sm:$0xf]  ;;  %v1217_v25 = vld [vmem:[%s1937_s1 + $0x184] sm:$0xf]  ;;  %v1113_v26 = vld [vmem:[%s1937_s1 + $0x18c] sm:$0xf0]  ;;  %v1156_v28 = vor.u32 %v1228_v18, %v1155_v16  ;;  %v976_v31 = vor.u32 %v1183_v20, %v975_v19 }
  0x24   :  { %494 = vmatmul.bf16.vlgmr.msra.gmra.mxu1 %v1544_v51  ;;  %531 = vmatpush.bf16.msra.mxu3 %v924_v54  ;;  %v1167_v27 = vld [vmem:[%s1936_s0 + $0x20] sm:$0xf0]  ;;  %v1071_v29 = vld [vmem:[%s1937_s1 + $0x128] sm:$0xf]  ;;  %v1207_v30 = vld [vmem:[%s1937_s1 + $0x130] sm:$0xf0]  ;;  %v1116_v36 = vor.u32 %v1217_v25, %v1113_v26 }
  0x25   :  { %581 = vmatpush.bf16.msrb.mxu1 %v1012_v46  ;;  %1158 = vmatmul.msk.bf16.gmra.mxu2 %vm460_vm0, %v1546_v52  ;;  %v1166_v32 = vld [vmem:[%s1936_s0 + $0x1c] sm:$0xf]  ;;  %v1143_v33 = vld [vmem:[%s1937_s1 + $0x1b8] sm:$0xf]  ;;  %v1225_v34 = vld [vmem:[%s1937_s1 + $0x1c0] sm:$0xf0] }
  0x26   :  { %547 = vmatpush.bf16.msrb.mxu2 %v1056_v42  ;;  %566 = vmatpush.bf16.msrb.mxu0 %v1152_v63  ;;  %v909_v35 = vld [vmem:[%s1936_s0 + $0x24] sm:$0xf0] }
  0x27   :  { %532 = vmatmul.bf16.vlgmr.msra.gmra.mxu3 %v1533_v47 }
  0x28   :  { %600 = vmatpush.bf16.msrb.mxu3 %v1108_v60 }
  0x29   :  { %582 = vmatpush.bf16.msrb.mxu1 %v1000_v3 }
  0x2a   :  { %548 = vmatpush.bf16.msrb.mxu2 %v1044_v59  ;;  %567 = vmatpush.bf16.msrb.mxu0 %v1140_v8 }
  0x2c   :  { %601 = vmatpush.bf16.msrb.mxu3 %v1096_v10 }
  0x2d   :  { %583 = vmatpush.bf16.msrb.mxu1 %v988_v17 }
  0x2e   :  { %549 = vmatpush.bf16.msrb.mxu2 %v1032_v9  ;;  %568 = vmatpush.bf16.msrb.mxu0 %v1128_v21 }
  0x2f   :  { %10 = vsyncpa [#allocation3], 0  ;;  %v1072_v37 = vor.u32 %v1207_v30, %v1071_v29  ;;  %v963_v38 = vld [vmem:[%s1937_s1 + $0x50] sm:$0xf]  ;;  %v1180_v39 = vld [vmem:[%s1937_s1 + $0x58] sm:$0xf0]  ;;  %v908_v40 = vor.u32 %v1167_v27, %v907_v24  ;;  %v1144_v43 = vor.u32 %v1225_v34, %v1143_v33  ;;  %v912_v44 = vor.u32 %v1166_v32, %v909_v35 }
  0x30   :  { %602 = vmatpush.bf16.msrb.mxu3 %v1084_v23  ;;  %v1059_v41 = vld [vmem:[%s1937_s1 + $0x110] sm:$0xf]  ;;  %v1204_v42 = vld [vmem:[%s1937_s1 + $0x118] sm:$0xf0]  ;;  %v1131_v45 = vld [vmem:[%s1937_s1 + $0x1a0] sm:$0xf]  ;;  %v964_v48 = vor.u32 %v1180_v39, %v963_v38  ;;  %v638_v18 = vlaneseq }
  0x31   :  { %584 = vmatpush.bf16.msrb.mxu1 %v976_v31  ;;  %v1222_v46 = vld [vmem:[%s1937_s1 + $0x1a8] sm:$0xf0]  ;;  %v1060_v49 = vor.u32 %v1204_v42, %v1059_v41  ;;  %v951_v50 = vld [vmem:[%s1937_s1 + $0x38] sm:$0xf]  ;;  %v1177_v53 = vld [vmem:[%s1937_s1 + $0x40] sm:$0xf0] }
  0x32   :  { %550 = vmatpush.bf16.msrb.mxu2 %v1020_v22  ;;  %569 = vmatpush.bf16.msrb.mxu0 %v1116_v36  ;;  %v1047_v54 = vld [vmem:[%s1937_s1 + $0xf8] sm:$0xf]  ;;  %v1201_v55 = vld [vmem:[%s1937_s1 + $0x100] sm:$0xf0]  ;;  %v1132_v56 = vor.u32 %v1222_v46, %v1131_v45  ;;  %v1119_v57 = vld [vmem:[%s1937_s1 + $0x188] sm:$0xf]  ;;  %v952_v60 = vor.u32 %v1177_v53, %v951_v50 }
  0x33   :  { %480 = vmatmul.bf16.gmra.mxu0 %v908_v40  ;;  %v1219_v59 = vld [vmem:[%s1937_s1 + $0x190] sm:$0xf0]  ;;  %v1048_v61 = vor.u32 %v1201_v55, %v1047_v54  ;;  %v939_v62 = vld [vmem:[%s1937_s1 + $0x20] sm:$0xf]  ;;  %v1174_v63 = vld [vmem:[%s1937_s1 + $0x28] sm:$0xf0] }
  0x34   :  { %603 = vmatpush.bf16.msrb.mxu3 %v1072_v37  ;;  %499 = vmatmul.bf16.gmra.mxu1 %v912_v44  ;;  %v1035_v0 = vld [vmem:[%s1937_s1 + $0xe0] sm:$0xf]  ;;  %v1198_v1 = vld [vmem:[%s1937_s1 + $0xe8] sm:$0xf0]  ;;  %v1120_v2 = vor.u32 %v1219_v59, %v1119_v57  ;;  %v940_v3 = vor.u32 %v1174_v63, %v939_v62  ;;  %v927_v5 = vld [vmem:[%s1937_s1 + $0x8] sm:$0xf] }
  0x35   :  { %551 = vmatmul.bf16.vlgmr.msrb.gmra.mxu2 %v1544_v51  ;;  %585 = vmatpush.bf16.msrb.mxu1 %v964_v48  ;;  %v1036_v4 = vor.u32 %v1198_v1, %v1035_v0  ;;  %v1171_v6 = vld [vmem:[%s1937_s1 + $0x10] sm:$0xf0]  ;;  %v1023_v7 = vld [vmem:[%s1937_s1 + $0xc8] sm:$0xf]  ;;  %v751_v11 = vld [vmem:[%s1939_s3 + $0x78] sm:$0xff]  ;;  %v1747_v21 = vshrl.u32 %v638_v18, 7 }
  0x36   :  { %623 = vmatpush.bf16.msra.mxu2 %v1156_v28  ;;  %v1195_v8 = vld [vmem:[%s1937_s1 + $0xd0] sm:$0xf0]  ;;  %v928_v9 = vor.u32 %v1171_v6, %v927_v5  ;;  %804 = vmatpush.msra.mxu0 %v751_v11  ;;  %v747_v12 = vld [vmem:[%s1939_s3 + $0x58] sm:$0xff]  ;;  %v745_v16 = vld [vmem:[%s1939_s3 + $0x48] sm:$0xff]  ;;  %v1264_v28 = vmov 14   ;;  %vm795_vm5 = vcmask 1041409  }
  0x37   :  { %537 = vmatmul.bf16.gmra.mxu3 %v908_v40  ;;  %v1024_v10 = vor.u32 %v1195_v8, %v1023_v7  ;;  %v746_v13 = vld [vmem:[%s1939_s3 + $0x50] sm:$0xff]  ;;  %v744_v19 = vld [vmem:[%s1939_s3 + $0x40] sm:$0xff]  ;;  %v743_v20 = vld [vmem:[%s1939_s3 + $0x38] sm:$0xff]  ;;  %v1753_v24 = vadd.s32 8, %v1747_v21  ;;  %v641_v29 = vperm.slane %v1264_v28, 0  ;;  %vm864_vm8 = vcmask 25600  }
  0x38   :  { %604 = vmatpush.bf16.msrb.mxu3 %v1060_v49  ;;  %v742_v22 = vld [vmem:[%s1939_s3 + $0x30] sm:$0xff]  ;;  %v741_v27 = vld [vmem:[%s1939_s3 + $0x28] sm:$0xff]  ;;  %v740_v32 = vld [vmem:[%s1939_s3 + $0x20] sm:$0xff]  ;;  %s884_s0 = sshll.u32 %s1941_s5, 4  ;;  %s885_s0 = int_to_ptr.hbm [resolvable:$true] %s884_s0 }
  0x39   :  { %586 = vmatpush.bf16.msrb.mxu1 %v952_v60  ;;  %vm647_vm1 = vcmp.lt.s32.totalorder %v1753_v24, %v641_v29  ;;  %v739_v36 = vld [vmem:[%s1939_s3 + $0x18] sm:$0xff]  ;;  %vm644_vm2 = vcmp.lt.s32.totalorder %v1747_v21, %v641_v29  ;;  %v738_v38 = vld [vmem:[%s1939_s3 + $0x10] sm:$0xff]  ;;  %v737_v42 = vld [vmem:[%s1939_s3 + $0x8] sm:$0xff] }
  0x3a   :  { %624 = vmatpush.bf16.msra.mxu2 %v1144_v43  ;;  %v736_v45 = vld [vmem:[%s1939_s3] sm:$0xff]  ;;  %v767_v46 = vld [vmem:[%s1939_s3 + $0xf8] sm:$0xff]  ;;  %v766_v49 = vld [vmem:[%s1939_s3 + $0xf0] sm:$0xff] }
  0x3b   :  { %v765_v54 = vld [vmem:[%s1939_s3 + $0xe8] sm:$0xff]  ;;  %v764_v57 = vld [vmem:[%s1939_s3 + $0xe0] sm:$0xff]  ;;  %v763_v63 = vld [vmem:[%s1939_s3 + $0xd8] sm:$0xff] }
  0x3c   :  { %605 = vmatpush.bf16.msrb.mxu3 %v1048_v61  ;;  %v761_v6 = vld [vmem:[%s1939_s3 + $0xc8] sm:$0xff]  ;;  %v756_v28 = vld [vmem:[%s1939_s3 + $0xa0] sm:$0xff] }
  0x3d   :  { %587 = vmatpush.bf16.msrb.mxu1 %v940_v3  ;;  %v757_v18 = vld [vmem:[%s1939_s3 + $0xa8] sm:$0xff] }
  0x3e   :  { %625 = vmatpush.bf16.msra.mxu2 %v1132_v56 }
  0x40   :  { %606 = vmatpush.bf16.msrb.mxu3 %v1036_v4 }
  0x41   :  { %588 = vmatpush.bf16.msrb.mxu1 %v928_v9 }
  0x42   :  { %626 = vmatpush.bf16.msra.mxu2 %v1120_v2  ;;  %v762_v2 = vld [vmem:[%s1939_s3 + $0xd0] sm:$0xff] }
  0x43   :  { %1159 = vmatmul.msk.bf16.vlgmr.msrb.gmra.mxu0 %vm460_vm0, %v1424_v58 }
  0x44   :  { %607 = vmatpush.bf16.msrb.mxu3 %v1024_v10  ;;  %589 = vmatmul.bf16.vlgmr.msrb.gmra.mxu1 %v1533_v47  ;;  %v750_v47 = vld [vmem:[%s1939_s3 + $0x70] sm:$0xff]  ;;  %v760_v10 = vld [vmem:[%s1939_s3 + $0xc0] sm:$0xff] }
  0x45   :  { %556 = vmatmul.bf16.gmra.mxu2 %v912_v44  ;;  %805 = vmatpush.msra.mxu0 %v750_v47 }
  0x46   :  { %824 = vmatpush.msra.mxu1 %v767_v46  ;;  %v753_v46 = vld [vmem:[%s1939_s3 + $0x88] sm:$0xff] }
  0x47   :  { %608 = vmatmul.bf16.vlgmr.msrb.gmra.mxu3 %v1544_v51 }
  0x48   :  { %825 = vmatpush.msra.mxu1 %v766_v49 }
  0x4a   :  { %826 = vmatpush.msra.mxu1 %v765_v54  ;;  %v752_v54 = vld [vmem:[%s1939_s3 + $0x80] sm:$0xff] }
  0x4c   :  { %827 = vmatpush.msra.mxu1 %v764_v57 }
  0x4e   :  { %828 = vmatpush.msra.mxu1 %v763_v63 }
  0x50   :  { %829 = vmatpush.msra.mxu1 %v762_v2  ;;  %v776_v2 = vld [vmem:[%s1939_s3 + $0x140] sm:$0xff] }
  0x52   :  { %830 = vmatpush.msra.mxu1 %v761_v6 }
  0x53   :  { %1160 = vmatmul.msk.bf16.gmra.mxu0 %vm460_vm0, %v1546_v52 }
  0x54   :  { %594 = vmatmul.bf16.gmra.mxu1 %v908_v40 }
  0x55   :  { %1161 = vmatmul.msk.bf16.vlgmr.msra.gmra.mxu2 %vm460_vm0, %v1424_v58  ;;  %v749_v58 = vld [vmem:[%s1939_s3 + $0x68] sm:$0xff]  ;;  %831 = vmatpush.msra.mxu1 %v760_v10  ;;  %v774_v10 = vld [vmem:[%s1939_s3 + $0x130] sm:$0xff] }
  0x56   :  { %806 = vmatpush.msra.mxu0 %v749_v58 }
  0x57   :  { %613 = vmatmul.bf16.gmra.mxu3 %v912_v44 }
  0x65   :  { %1162 = vmatmul.msk.bf16.gmra.mxu2 %vm460_vm0, %v1546_v52  ;;  %v748_v52 = vld [vmem:[%s1939_s3 + $0x60] sm:$0xff] }
  0x66   :  { %807 = vmatpush.msra.mxu0 %v748_v52 }
  0x68   :  { %808 = vmatpush.msra.mxu0 %v747_v12  ;;  %v758_v12 = vld [vmem:[%s1939_s3 + $0xb0] sm:$0xff] }
  0x6a   :  { %809 = vmatpush.msra.mxu0 %v746_v13 }
  0x6c   :  { %810 = vmatpush.msra.mxu0 %v745_v16  ;;  %v1265_v16 = vmov 13  }
  0x6e   :  { %811 = vmatpush.msra.mxu0 %v744_v19 }
  0x70   :  { %812 = vmatpush.msra.mxu0 %v743_v20 }
  0x72   :  { %813 = vmatpush.msra.mxu0 %v742_v22 }
  0x74   :  { %814 = vmatpush.msra.mxu0 %v741_v27  ;;  %v783_v27 = vld [vmem:[%s1939_s3 + $0x178] sm:$0xff] }
  0x75   :  { %844 = vmatpush.msra.mxu3 %v783_v27 }
  0x76   :  { %815 = vmatpush.msra.mxu0 %v740_v32 }
  0x78   :  { %816 = vmatpush.msra.mxu0 %v739_v36 }
  0x7a   :  { %817 = vmatpush.msra.mxu0 %v738_v38  ;;  %v781_v38 = vld [vmem:[%s1939_s3 + $0x168] sm:$0xff] }
  0x7c   :  { %818 = vmatpush.msra.mxu0 %v737_v42 }
  0x7e   :  { %819 = vmatpush.msra.mxu0 %v736_v45  ;;  %v780_v45 = vld [vmem:[%s1939_s3 + $0x160] sm:$0xff] }
  0x98   :  { %v514_v51 = vpop.f32.mrf.mxu2 }
  0xa0   :  { %v516_v14 = vpop.f32.mrf.mxu2  ;;  %v476_v15 = vpop.f32.mrf.mxu0 }
  0xa1   :  { %v495_v17 = vpop.f32.mrf.mxu1 }
  0xa2   :  { %v496_v25 = vadd.f32 %v495_v17, %v476_v15  ;;  %v1822_v15 = vld [vmem:[%s1938_s2] sm:$0x7]  ;;  %v1824_v17 = vperm.slane %v1265_v16, 0 }
  0xa4   :  { %v515_v34 = vadd.f32 %v514_v51, %v496_v25  ;;  %v759_v51 = vld [vmem:[%s1939_s3 + $0xb8] sm:$0xff]  ;;  %vm648_vm3 = vcmp.lt.s32.totalorder %v1753_v24, %v1824_v17  ;;  %vm645_vm4 = vcmp.lt.s32.totalorder %v1747_v21, %v1824_v17 }
  0xa5   :  { %832 = vmatpush.msra.mxu1 %v759_v51  ;;  %v771_v17 = vld [vmem:[%s1939_s3 + $0x118] sm:$0xff] }
  0xa6   :  { %v662_v40 = vsel %vm644_vm2, %v515_v34, -3.4028235e+38  ;;  %v755_v34 = vld [vmem:[%s1939_s3 + $0x98] sm:$0xff] }
  0xa7   :  { %833 = vmatpush.msra.mxu1 %v758_v12  ;;  %v1266_v12 = vmov 12  }
  0xa8   :  { %v519_v23 = vpop.f32.mrf.mxu2  ;;  %v478_v26 = vpop.f32.mrf.mxu0 }
  0xa9   :  { %v497_v30 = vpop.f32.mrf.mxu1  ;;  %834 = vmatpush.msra.mxu1 %v757_v18 }
  0xaa   :  { %v498_v31 = vadd.f32 %v497_v30, %v478_v26  ;;  %v1762_v33 = vpop.f32.mrf.mxu3  ;;  %v718_v26 = vperm.slane %v1822_v15, 0 }
  0xab   :  { %835 = vmatpush.msra.mxu1 %v756_v28 }
  0xac   :  { %v517_v35 = vadd.f32 %v516_v14, %v498_v31 }
  0xad   :  { %836 = vmatpush.msra.mxu1 %v755_v34 }
  0xae   :  { %v665_v37 = vsel %vm647_vm1, %v517_v35, -3.4028235e+38 }
  0xaf   :  { %v674_v43 = vmax.f32 %v662_v40, %v665_v37 }
  0xb0   :  { %v521_v39 = vpop.f32.mrf.mxu2  ;;  %v481_v41 = vpop.f32.mrf.mxu0 }
  0xb1   :  { %v500_v44 = vpop.f32.mrf.mxu1  ;;  %v675_v50 = vrot.slane %v674_v43, 4 }
  0xb2   :  { %v535_v48 = vpop.f32.mrf.mxu3  ;;  %v501_v53 = vadd.f32 %v500_v44, %v481_v41 }
  0xb3   :  { %v676_v59 = vmax.f32 %v674_v43, %v675_v50 }
  0xb4   :  { %v520_v61 = vadd.f32 %v519_v23, %v501_v53  ;;  %v779_v53 = vld [vmem:[%s1939_s3 + $0x158] sm:$0xff] }
  0xb5   :  { %v677_v3 = vrot.slane %v676_v59, 2 }
  0xb6   :  { %v668_v4 = vsel %vm644_vm2, %v520_v61, -3.4028235e+38  ;;  %v777_v61 = vld [vmem:[%s1939_s3 + $0x148] sm:$0xff] }
  0xb7   :  { %v678_v11 = vmax.f32 %v676_v59, %v677_v3  ;;  %v778_v59 = vld [vmem:[%s1939_s3 + $0x150] sm:$0xff] }
  0xb8   :  { %v552_v55 = vpop.f32.mrf.mxu2  ;;  %v483_v56 = vpop.f32.mrf.mxu0 }
  0xb9   :  { %v502_v60 = vpop.f32.mrf.mxu1  ;;  %v679_v13 = vrot.slane %v678_v11, 1  ;;  %v553_v19 = vadd.f32 %v552_v55, %v1762_v33  ;;  %v782_v33 = vld [vmem:[%s1939_s3 + $0x170] sm:$0xff] }
  0xba   :  { %v503_v62 = vadd.f32 %v502_v60, %v483_v56  ;;  %v1796_v0 = vpop.f32.mrf.mxu3  ;;  %845 = vmatpush.msra.mxu3 %v782_v33 }
  0xbb   :  { %v680_v32 = vmax.f32 %v678_v11, %v679_v13  ;;  %v643_v13 = vperm.slane %v1266_v12, 0 }
  0xbc   :  { %v522_v1 = vadd.f32 %v521_v39, %v503_v62  ;;  %v754_v39 = vld [vmem:[%s1939_s3 + $0x90] sm:$0xff]  ;;  %846 = vmatpush.msra.mxu3 %v781_v38 }
  0xbd   :  { %v724_v42 = vadd.f32 %v718_v26, %v680_v32  ;;  %837 = vmatpush.msra.mxu1 %v754_v39  ;;  %vm649_vm6 = vcmp.lt.s32.totalorder %v1753_v24, %v643_v13  ;;  %vm646_vm7 = vcmp.lt.s32.totalorder %v1747_v21, %v643_v13  ;;  %v769_v32 = vld [vmem:[%s1939_s3 + $0x108] sm:$0xff]  ;;  %v719_v39 = vperm.slane %v1822_v15, 1 }
  0xbe   :  { %v671_v5 = vsel %vm647_vm1, %v522_v1, -3.4028235e+38  ;;  %847 = vmatpush.msra.mxu3 %v780_v45 }
  0xbf   :  { %v695_v7 = vmax.f32 %v668_v4, %v671_v5  ;;  %838 = vmatpush.msra.mxu1 %v753_v46  ;;  %v730_v55 = vmax.f32 %v724_v42, 0.0 }
  0xc0   :  { %v554_v8 = vpop.f32.mrf.mxu2  ;;  %v571_v9 = vpop.f32.mrf.mxu0  ;;  %848 = vmatpush.msra.mxu3 %v779_v53 }
  0xc1   :  { %v696_v47 = vrot.slane %v695_v7, 4  ;;  %v555_v22 = vadd.f32 %v554_v8, %v535_v48  ;;  %v572_v30 = vadd.f32 %v571_v9, %v553_v19  ;;  %v590_v37 = vpop.f32.mrf.mxu1  ;;  %839 = vmatpush.msra.mxu1 %v752_v54  ;;  %v775_v8 = vld [vmem:[%s1939_s3 + $0x138] sm:$0xff]  ;;  %v772_v19 = vld [vmem:[%s1939_s3 + $0x120] sm:$0xff] }
  0xc2   :  { %v1814_v52 = vpop.f32.mrf.mxu3  ;;  %849 = vmatpush.msra.mxu3 %v778_v59 }
  0xc3   :  { %v697_v58 = vmax.f32 %v695_v7, %v696_v47  ;;  %v663_v40 = vsel %vm645_vm4, %v572_v30, -3.4028235e+38 }
  0xc4   :  { %850 = vmatpush.msra.mxu3 %v777_v61 }
  0xc5   :  { %v698_v14 = vrot.slane %v697_v58, 2 }
  0xc6   :  { %851 = vmatpush.msra.mxu3 %v776_v2 }
  0xc7   :  { %v699_v20 = vmax.f32 %v697_v58, %v698_v14 }
  0xc8   :  { %v557_v23 = vpop.f32.mrf.mxu2  ;;  %v573_v25 = vpop.f32.mrf.mxu0  ;;  %852 = vmatpush.msra.mxu3 %v775_v8 }
  0xc9   :  { %v700_v29 = vrot.slane %v699_v20, 1  ;;  %v574_v31 = vadd.f32 %v573_v25, %v555_v22  ;;  %v558_v62 = vadd.f32 %v557_v23, %v1796_v0  ;;  %v592_v1 = vpop.f32.mrf.mxu1 }
  0xca   :  { %v609_v41 = vpop.f32.mrf.mxu3  ;;  %853 = vmatpush.msra.mxu3 %v774_v10 }
  0xcb   :  { %v666_v35 = vsel %vm648_vm3, %v574_v31, -3.4028235e+38  ;;  %v701_v36 = vmax.f32 %v699_v20, %v700_v29  ;;  %v610_v51 = vadd.f32 %v609_v41, %v590_v37 }
  0xcc   :  { %v681_v44 = vmax.f32 %v663_v40, %v666_v35  ;;  %v768_v35 = vld [vmem:[%s1939_s3 + $0x100] sm:$0xff] }
  0xcd   :  { %v727_v43 = vadd.f32 %v718_v26, %v701_v36  ;;  %v770_v26 = vld [vmem:[%s1939_s3 + $0x110] sm:$0xff] }
  0xce   :  { %v682_v57 = vrot.slane %v681_v44, 4 }
  0xcf   :  { %v733_v49 = vmax.f32 %v727_v43, 0.0 }
  0xd0   :  { %v559_v48 = vpop.f32.mrf.mxu2  ;;  %v576_v50 = vpop.f32.mrf.mxu0  ;;  %v683_v63 = vmax.f32 %v681_v44, %v682_v57 }
  0xd1   :  { %v794_v56 = vrot.slane %v733_v49, 7  ;;  %v560_v3 = vadd.f32 %v559_v48, %v1814_v52  ;;  %v577_v4 = vadd.f32 %v576_v50, %v558_v62  ;;  %v773_v52 = vld [vmem:[%s1939_s3 + $0x128] sm:$0xff]  ;;  %v595_v27 = vpop.f32.mrf.mxu1 }
  0xd2   :  { %v611_v5 = vpop.f32.mrf.mxu3  ;;  %v684_v0 = vrot.slane %v683_v63, 2  ;;  %854 = vmatpush.msra.mxu3 %v773_v52  ;;  %v1233_v52 = vld [vmem:[%s1940_s4] ss:$0 sm:$0xff]  ;;  %s1267_s4 = smov [#allocation2]  }
  0xd3   :  { %v796_v60 = vsel %vm795_vm5, %v794_v56, %v730_v55  ;;  %v669_v11 = vsel %vm645_vm4, %v577_v4, -3.4028235e+38  ;;  %v612_v16 = vadd.f32 %v611_v5, %v592_v1  ;;  %s882_s20 = sshll.u32 %s1267_s4, 4  ;;  %s883_s20 = int_to_ptr.vmem [resolvable:$true] %s882_s20 }
  0xd4   :  { %820 = vmatmul.f32.vlgmr.msra.gmra.mxu0 %v796_v60  ;;  %v685_v14 = vmax.f32 %v683_v63, %v684_v0  ;;  %855 = vmatpush.msra.mxu3 %v772_v19  ;;  %v720_v0 = vperm.slane %v1822_v15, 2 }
  0xd6   :  { %856 = vmatpush.msra.mxu3 %v771_v17  ;;  %v686_v29 = vrot.slane %v685_v14, 1 }
  0xd8   :  { %v628_v6 = vpop.f32.mrf.mxu2  ;;  %v578_v7 = vpop.f32.mrf.mxu0  ;;  %857 = vmatpush.msra.mxu3 %v770_v26  ;;  %v687_v37 = vmax.f32 %v685_v14, %v686_v29 }
  0xd9   :  { %v579_v9 = vadd.f32 %v578_v7, %v560_v3  ;;  %v629_v22 = vadd.f32 %v628_v6, %v610_v51  ;;  %v597_v46 = vpop.f32.mrf.mxu1 }
  0xda   :  { %v614_v28 = vpop.f32.mrf.mxu3  ;;  %858 = vmatpush.msra.mxu3 %v769_v32  ;;  %v725_v44 = vadd.f32 %v719_v39, %v687_v37 }
  0xdb   :  { %v672_v47 = vsel %vm648_vm3, %v579_v9, -3.4028235e+38  ;;  %v664_v33 = vsel %vm646_vm7, %v629_v22, -3.4028235e+38  ;;  %v615_v43 = vadd.f32 %v614_v28, %v595_v27 }
  0xdc   :  { %v702_v58 = vmax.f32 %v669_v11, %v672_v47  ;;  %859 = vmatpush.msra.mxu3 %v768_v35  ;;  %v731_v55 = vmax.f32 %v725_v44, 0.0 }
  0xde   :  { %v703_v18 = vrot.slane %v702_v58, 4 }
  0xe0   :  { %v630_v20 = vpop.f32.mrf.mxu2  ;;  %v704_v23 = vmax.f32 %v702_v58, %v703_v18 }
  0xe1   :  { %v631_v25 = vadd.f32 %v630_v20, %v612_v16 }
  0xe2   :  { %v705_v30 = vrot.slane %v704_v23, 2  ;;  %v616_v48 = vpop.f32.mrf.mxu3 }
  0xe3   :  { %v667_v31 = vsel %vm649_vm6, %v631_v25, -3.4028235e+38  ;;  %v617_v53 = vadd.f32 %v616_v48, %v597_v46 }
  0xe4   :  { %v706_v34 = vmax.f32 %v704_v23, %v705_v30  ;;  %v688_v36 = vmax.f32 %v664_v33, %v667_v31 }
  0xe6   :  { %v707_v38 = vrot.slane %v706_v34, 1  ;;  %v689_v42 = vrot.slane %v688_v36, 4 }
  0xe8   :  { %v633_v40 = vpop.f32.mrf.mxu2  ;;  %v708_v41 = vmax.f32 %v706_v34, %v707_v38  ;;  %v690_v50 = vmax.f32 %v688_v36, %v689_v42 }
  0xe9   :  { %v634_v54 = vadd.f32 %v633_v40, %v615_v43 }
  0xea   :  { %v728_v45 = vadd.f32 %v719_v39, %v708_v41  ;;  %v691_v61 = vrot.slane %v690_v50, 2 }
  0xeb   :  { %v670_v62 = vsel %vm646_vm7, %v634_v54, -3.4028235e+38 }
  0xec   :  { %v734_v49 = vmax.f32 %v728_v45, 0.0  ;;  %v692_v2 = vmax.f32 %v690_v50, %v691_v61 }
  0xee   :  { %v797_v56 = vrot.slane %v734_v49, 7  ;;  %v693_v5 = vrot.slane %v692_v2, 1 }
  0xf0   :  { %v635_v57 = vpop.f32.mrf.mxu2  ;;  %v798_v60 = vsel %vm795_vm5, %v797_v56, %v731_v55  ;;  %v694_v8 = vmax.f32 %v692_v2, %v693_v5 }
  0xf1   :  { %v636_v59 = vadd.f32 %v635_v57, %v617_v53  ;;  %840 = vmatmul.f32.vlgmr.msra.gmra.mxu1 %v798_v60 }
  0xf2   :  { %v726_v11 = vadd.f32 %v720_v0, %v694_v8 }
  0xf3   :  { %v673_v63 = vsel %vm649_vm6, %v636_v59, -3.4028235e+38 }
  0xf4   :  { %v709_v1 = vmax.f32 %v670_v62, %v673_v63  ;;  %v732_v21 = vmax.f32 %v726_v11, 0.0 }
  0xf6   :  { %v710_v3 = vrot.slane %v709_v1, 4 }
  0xf8   :  { %v711_v4 = vmax.f32 %v709_v1, %v710_v3 }
  0xfa   :  { %v712_v6 = vrot.slane %v711_v4, 2 }
  0xfc   :  { %v713_v7 = vmax.f32 %v711_v4, %v712_v6 }
  0xfe   :  { %v714_v9 = vrot.slane %v713_v7, 1 }
 0x100   :  { %v715_v10 = vmax.f32 %v713_v7, %v714_v9 }
 0x102   :  { %v729_v47 = vadd.f32 %v720_v0, %v715_v10 }
 0x104   :  { %v735_v51 = vmax.f32 %v729_v47, 0.0 }
 0x106   :  { %v799_v58 = vrot.slane %v735_v51, 7 }
 0x108   :  { %v800_v24 = vsel %vm795_vm5, %v799_v58, %v732_v21 }
 0x109   :  { %860 = vmatmul.f32.vlgmr.msra.gmra.mxu3 %v800_v24 }
 0x151   :  { %v821_v12 = vpop.f32.mrf.mxu0 }
 0x152   :  { %v822_v14 = vadd.f32 %v1233_v52, %v821_v12 }
 0x16e   :  { %v841_v13 = vpop.f32.mrf.mxu1 }
 0x16f   :  { %v842_v16 = vadd.f32 %v841_v13, %v822_v14 }
 0x18c   :  { %v861_v18 = vpop.f32.mrf.mxu3 }
 0x18d   :  { %v862_v15 = vadd.f32 %v861_v18, %v842_v16 }
 0x18f   :  { %v865_v19 = vsel %vm864_vm8, %v862_v15, -inf }
 0x190   :  { %866 = vmax.xlane.f32.xlu0 %v865_v19 }
 0x203   :  { %v867_v20 = vpop.xlane.xlu0 %866 }
 0x204   :  { %v868_v17 = vsub.f32 %v862_v15, %v867_v20 }
 0x206   :  { %v869_v22 = vmul.f32 1.442695, %v868_v17 }
 0x208   :  { %1234 = vpow2.f32 %v869_v22 }
 0x20e   :  { %v1235_v23 = vpop.eup %1234 }
 0x20f   :  { %v871_v25 = vsel %vm864_vm8, %v1235_v23, 0.0 }
 0x210   :  { %872 = vadd.xlane.f32.xlu0 %v871_v25 }
 0x283   :  { %v873_v26 = vpop.xlane.xlu0 %872 }
 0x284   :  { %1236 = vrcp.f32 %v873_v26 }
 0x28a   :  { %v1237_v27 = vpop.eup %1236 }
 0x28b   :  { %v875_v28 = vmul.f32 %v1237_v27, %v1235_v23 }
 0x28d   :  { %876 = vst.msk [vmem:[#allocation2] sm:$0x3] %vm864_vm8, %v875_v28 }
 0x28e   :  { %887 = dma.vmem_to_hbm [thread:$0]  %s883_s20, 32, %s885_s0, [#allocation3]  }
 0x28f   :  { %1262 = dma.done.wait [#allocation3], 32  }
 0x290   :  { %1263 = vsyncadd [#allocation3], 4294967264 }
 0x291   :  { %892 = vsyncpa [#allocation3], 1 }

</bundles_post_ra>
